<compile_context>
chip_gen: v6e
topology: v6e:2x2x1
jax: 0.10.0
libtpu: 0.0.40
codegen_flags: <defaults>
</compile_context>

<pallas_src>
import functools

import jax
import jax.numpy as jnp
from jax.experimental import pallas as pl
from jax.experimental.pallas import tpu as pltpu

_EPS = 1e-6


def _round_up(x, m):
    return ((x + m - 1) // m) * m


def _dice_partial_kernel(pred_ref, gt_ref, inter_ref, p2_ref, g2_ref, *,
                         tm, n_k_per_split, n_elems, ragged):
    """Accumulates per-(split, batch) partial sums of p*g, p*p, g*g into the
    (8,128) output blocks (resident across the innermost grid axis)."""
    k = pl.program_id(2)

    @pl.when(k == 0)
    def _():
        inter_ref[...] = jnp.zeros_like(inter_ref)
        p2_ref[...] = jnp.zeros_like(p2_ref)
        g2_ref[...] = jnp.zeros_like(g2_ref)

    x = pred_ref[...].astype(jnp.float32)          # (TM, 128)
    g = gt_ref[...].astype(jnp.float32)            # (TM, 128)

    # Single-EUP sigmoid: sigmoid(x) == 0.5 * tanh(0.5 * x) + 0.5
    p = 0.5 * jnp.tanh(0.5 * x) + 0.5

    if ragged:
        # Mask elements past the true per-batch element count (covers the lane
        # tail, the partial last row-block, and any clamped duplicate block).
        c = pl.program_id(0)
        row0 = (c * n_k_per_split + k) * tm
        rows = jax.lax.broadcasted_iota(jnp.int32, (tm, 128), 0)
        lanes = jax.lax.broadcasted_iota(jnp.int32, (tm, 128), 1)
        flat = (row0 + rows) * 128 + lanes
        valid = flat < n_elems
        p = jnp.where(valid, p, 0.0)
        g = jnp.where(valid, g, 0.0)

    grp = tm // 8
    # (TM,128) -> (TM//8, 8, 128) groups whole (8,128) vregs: the axis-0 sum is
    # a pure VPU vreg-add tree (no XLU), then one (8,128) add into the output.
    inter_ref[...] += jnp.sum((p * g).reshape(grp, 8, 128), axis=0)
    p2_ref[...] += jnp.sum((p * p).reshape(grp, 8, 128), axis=0)
    g2_ref[...] += jnp.sum((g * g).reshape(grp, 8, 128), axis=0)


def text_dice_loss(pred_regions, regions_gt, ohem_mask=None, *, eps=_EPS, tm=4096):
    """Pallas TPU implementation of TextDiceLoss.forward.

    ohem_mask is accepted for signature parity but (exactly as in the PyTorch
    reference forward) never used in the computation.
    """
    del ohem_mask  # TODO(synk): unused in the PyTorch forward (only reshaped).
    B = pred_regions.shape[0]
    pred2d = pred_regions.reshape(B, -1)
    gt2d = regions_gt.reshape(B, -1)
    N = pred2d.shape[1]

    # Lane-dense layout: rows of 128 lanes.  TM rows per reduction step,
    # multiple of 32 (covers f32/bf16/int8 sublane tiling).
    R = pl.cdiv(N, 128)                             # 128-lane rows (ceil)
    TM = _round_up(min(tm, _round_up(R, 32)), 32)   # rows per grid step
    n_k_total = pl.cdiv(R, TM)

    # v7x megacore for tiny batch: split the reduction axis across 2 cores.
    split = 2 if (B == 1 and n_k_total >= 2) else 1
    n_k_s = pl.cdiv(n_k_total, split)
    needs_clamp = (split * n_k_s != n_k_total)
    rows_covered = split * n_k_s * TM
    ragged = (rows_covered * 128 != N)

    # Only a tiny (<128 elem/row) pad so the (B, R, 128) reshape is legal.
    # Pad values are irrelevant: the in-kernel mask zeroes every element >= N.
    N128 = R * 128
    if N128 != N:
        pad = N128 - N
        pred2d = jnp.pad(pred2d, ((0, 0), (0, pad)))
        gt2d = jnp.pad(gt2d, ((0, 0), (0, pad)))
    pred3d = pred2d.reshape(B, R, 128)
    gt3d = gt2d.reshape(B, R, 128)

    last_blk = n_k_total - 1

    def in_map(c, b, k):
        idx = c * n_k_s + k
        if needs_clamp:
            # Duplicate-read of the last valid block; its contribution is fully
            # masked out because the logical flat index is >= N.
            idx = jnp.minimum(idx, last_blk)
        return (b, idx, 0)

    def out_map(c, b, k):
        return (c, b, 0, 0)

    kernel = functools.partial(
        _dice_partial_kernel,
        tm=TM, n_k_per_split=n_k_s, n_elems=N, ragged=ragged)

    out_sds = jax.ShapeDtypeStruct((split, B, 8, 128), jnp.float32)
    out_spec = pl.BlockSpec((pl.Squeezed(), pl.Squeezed(), 8, 128), out_map)

    inter, p2, g2 = pl.pallas_call(
        kernel,
        out_shape=(out_sds, out_sds, out_sds),
        grid_spec=pltpu.PrefetchScalarGridSpec(
            num_scalar_prefetch=0,
            grid=(split, B, n_k_s),             # reduction axis innermost
            in_specs=[
                pl.BlockSpec((pl.Squeezed(), TM, 128), in_map),
                pl.BlockSpec((pl.Squeezed(), TM, 128), in_map),
            ],
            out_specs=(out_spec, out_spec, out_spec),
        ),
        compiler_params=pltpu.CompilerParams(
            dimension_semantics=("parallel", "parallel", "arbitrary"),
            vmem_limit_bytes=32 * 1024 * 1024,
        ),
    )(pred3d, gt3d)

    # Tiny host-side epilogue: split*B*3*1024 elements.
    inter_b = jnp.sum(inter, axis=(0, 2, 3))
    p2_b = jnp.sum(p2, axis=(0, 2, 3)) + eps
    g2_b = jnp.sum(g2, axis=(0, 2, 3)) + eps
    dice = (2.0 * inter_b + eps) / (p2_b + g2_b)
    return jnp.sum(1.0 - dice)


def _reference(pred_regions, regions_gt):
    B = pred_regions.shape[0]
    p = jax.nn.sigmoid(pred_regions.astype(jnp.float32)).reshape(B, -1)
    g = regions_gt.astype(jnp.float32).reshape(B, -1)
    inter = jnp.sum(p * g, axis=1)
    ps = jnp.sum(p * p, axis=1) + _EPS
    gs = jnp.sum(g * g, axis=1) + _EPS
    dice = (2.0 * inter + _EPS) / (ps + gs)
    return jnp.sum(1.0 - dice)


if __name__ == "__main__":
    key = jax.random.PRNGKey(0)
    k1, k2, k3 = jax.random.split(key, 3)

    # Main case: B=2, C=4, H=W=16 (N = 1024, multiple of 128).
    B, C, H, W = 2, 4, 16, 16
    pred = jax.random.normal(k1, (B, C, H, W), dtype=jnp.float32)
    gt = (jax.random.uniform(k2, (B, C, H, W)) > 0.5).astype(jnp.float32)
    ohem = (jax.random.uniform(k3, (B, C, H, W)) > 0.3).astype(jnp.float32)

    loss = jax.block_until_ready(text_dice_loss(pred, gt, ohem))
    ref = jax.block_until_ready(_reference(pred, gt))
    assert jnp.allclose(loss, ref, rtol=1e-5, atol=1e-5), (loss, ref)

    # Ragged case: N = 663 (not a multiple of 128) -> lane pad + in-kernel mask.
    pred_odd = jax.random.normal(k1, (2, 3, 13, 17), dtype=jnp.float32)
    gt_odd = (jax.random.uniform(k2, (2, 3, 13, 17)) > 0.5).astype(jnp.float32)
    loss_odd = jax.block_until_ready(text_dice_loss(pred_odd, gt_odd, None))
    ref_odd = jax.block_until_ready(_reference(pred_odd, gt_odd))
    assert jnp.allclose(loss_odd, ref_odd, rtol=1e-5, atol=1e-5), (loss_odd, ref_odd)

    # B == 1 path: reduction axis split across 2 "cores" (small tm to force it).
    pred_b1 = jax.random.normal(k1, (1, 8, 32, 32), dtype=jnp.float32)
    gt_b1 = (jax.random.uniform(k2, (1, 8, 32, 32)) > 0.5).astype(jnp.float32)
    loss_b1 = jax.block_until_ready(text_dice_loss(pred_b1, gt_b1, None, tm=32))
    ref_b1 = jax.block_until_ready(_reference(pred_b1, gt_b1))
    assert jnp.allclose(loss_b1, ref_b1, rtol=1e-5, atol=1e-5), (loss_b1, ref_b1)

    # B == 1, split=2, non-divisible n_k (clamped duplicate block) + ragged tail.
    pred_cl = jax.random.normal(k1, (1, 5, 45, 45), dtype=jnp.float32)
    gt_cl = (jax.random.uniform(k2, (1, 5, 45, 45)) > 0.5).astype(jnp.float32)
    loss_cl = jax.block_until_ready(text_dice_loss(pred_cl, gt_cl, None, tm=32))
    ref_cl = jax.block_until_ready(_reference(pred_cl, gt_cl))
    assert jnp.allclose(loss_cl, ref_cl, rtol=1e-5, atol=1e-5), (loss_cl, ref_cl)

    print("KERNEL_OK")
</pallas_src>

<mosaic_0001>
module attributes {stable_mosaic.version = 11 : i64} {
  func.func @_dice_partial_kernel(%arg0: i32, %arg1: i32, %arg2: i32, %arg3: memref<1x32x128xf32, #tpu.memory_space<vmem>>, %arg4: memref<1x32x128xf32, #tpu.memory_space<vmem>>, %arg5: memref<1x1x8x128xf32, #tpu.memory_space<vmem>>, %arg6: memref<1x1x8x128xf32, #tpu.memory_space<vmem>>, %arg7: memref<1x1x8x128xf32, #tpu.memory_space<vmem>>) attributes {dimension_semantics = [#tpu.dimension_semantics<parallel>, #tpu.dimension_semantics<parallel>, #tpu.dimension_semantics<arbitrary>], iteration_bounds = array<i64: 1, 2, 1>, scalar_prefetch = 0 : i64, scratch_operands = 0 : i64, tpu.core_type = #tpu.core_type<tc>, window_params = [{transform_indices = @transform_0, window_bounds = array<i64: 1, 32, 128>}, {transform_indices = @transform_1, window_bounds = array<i64: 1, 32, 128>}, {transform_indices = @transform_2, window_bounds = array<i64: 1, 1, 8, 128>}, {transform_indices = @transform_3, window_bounds = array<i64: 1, 1, 8, 128>}, {transform_indices = @transform_4, window_bounds = array<i64: 1, 1, 8, 128>}]} {
    %c0_i32 = arith.constant 0 : i32
    %0 = arith.cmpi eq, %arg2, %c0_i32 : i32
    %1 = arith.extui %0 : i1 to i32
    %c0_i32_0 = arith.constant 0 : i32
    %2 = arith.cmpi ne, %1, %c0_i32_0 : i32
    scf.if %2 {
      %cst_37 = arith.constant 0.000000e+00 : f32
      %57 = vector.broadcast %cst_37 : f32 to vector<8x128xf32>
      %c0_38 = arith.constant 0 : index
      %c0_39 = arith.constant 0 : index
      %c0_40 = arith.constant 0 : index
      %c0_41 = arith.constant 0 : index
      %58 = vector.load %arg5[%c0_38, %c0_39, %c0_40, %c0_41] : memref<1x1x8x128xf32, #tpu.memory_space<vmem>>, vector<1x1x8x128xf32>
      %59 = vector.shape_cast %58 : vector<1x1x8x128xf32> to vector<8x128xf32>
      %60 = vector.shape_cast %57 : vector<8x128xf32> to vector<1x1x8x128xf32>
      tpu.vector_store %arg5[%c0_38, %c0_39, %c0_40, %c0_41], %60 {strides = array<i32>} : memref<1x1x8x128xf32, #tpu.memory_space<vmem>>, vector<1x1x8x128xf32>,
      %cst_42 = arith.constant 0.000000e+00 : f32
      %61 = vector.broadcast %cst_42 : f32 to vector<8x128xf32>
      %c0_43 = arith.constant 0 : index
      %c0_44 = arith.constant 0 : index
      %c0_45 = arith.constant 0 : index
      %c0_46 = arith.constant 0 : index
      %62 = vector.load %arg6[%c0_43, %c0_44, %c0_45, %c0_46] : memref<1x1x8x128xf32, #tpu.memory_space<vmem>>, vector<1x1x8x128xf32>
      %63 = vector.shape_cast %62 : vector<1x1x8x128xf32> to vector<8x128xf32>
      %64 = vector.shape_cast %61 : vector<8x128xf32> to vector<1x1x8x128xf32>
      tpu.vector_store %arg6[%c0_43, %c0_44, %c0_45, %c0_46], %64 {strides = array<i32>} : memref<1x1x8x128xf32, #tpu.memory_space<vmem>>, vector<1x1x8x128xf32>,
      %cst_47 = arith.constant 0.000000e+00 : f32
      %65 = vector.broadcast %cst_47 : f32 to vector<8x128xf32>
      %c0_48 = arith.constant 0 : index
      %c0_49 = arith.constant 0 : index
      %c0_50 = arith.constant 0 : index
      %c0_51 = arith.constant 0 : index
      %66 = vector.load %arg7[%c0_48, %c0_49, %c0_50, %c0_51] : memref<1x1x8x128xf32, #tpu.memory_space<vmem>>, vector<1x1x8x128xf32>
      %67 = vector.shape_cast %66 : vector<1x1x8x128xf32> to vector<8x128xf32>
      %68 = vector.shape_cast %65 : vector<8x128xf32> to vector<1x1x8x128xf32>
      tpu.vector_store %arg7[%c0_48, %c0_49, %c0_50, %c0_51], %68 {strides = array<i32>} : memref<1x1x8x128xf32, #tpu.memory_space<vmem>>, vector<1x1x8x128xf32>,
    } else {
    }
    %c0 = arith.constant 0 : index
    %c0_1 = arith.constant 0 : index
    %c0_2 = arith.constant 0 : index
    %3 = vector.load %arg3[%c0, %c0_1, %c0_2] : memref<1x32x128xf32, #tpu.memory_space<vmem>>, vector<1x32x128xf32>
    %4 = vector.shape_cast %3 : vector<1x32x128xf32> to vector<32x128xf32>
    %c0_3 = arith.constant 0 : index
    %c0_4 = arith.constant 0 : index
    %c0_5 = arith.constant 0 : index
    %5 = vector.load %arg4[%c0_3, %c0_4, %c0_5] : memref<1x32x128xf32, #tpu.memory_space<vmem>>, vector<1x32x128xf32>
    %6 = vector.shape_cast %5 : vector<1x32x128xf32> to vector<32x128xf32>
    %cst = arith.constant 5.000000e-01 : f32
    %7 = vector.broadcast %cst : f32 to vector<32x128xf32>
    %8 = arith.mulf %7, %4 : vector<32x128xf32>
    %9 = math.tanh %8 : vector<32x128xf32>
    %cst_6 = arith.constant 5.000000e-01 : f32
    %10 = vector.broadcast %cst_6 : f32 to vector<32x128xf32>
    %11 = arith.mulf %10, %9 : vector<32x128xf32>
    %cst_7 = arith.constant 5.000000e-01 : f32
    %12 = vector.broadcast %cst_7 : f32 to vector<32x128xf32>
    %13 = arith.addf %11, %12 : vector<32x128xf32>
    %c1_i32 = arith.constant 1 : i32
    %14 = arith.muli %arg0, %c1_i32 : i32
    %15 = arith.addi %14, %arg2 : i32
    %c32_i32 = arith.constant 32 : i32
    %16 = arith.muli %15, %c32_i32 : i32
    %17 = tpu.iota {dimensions = array<i32: 0>} : vector<32x128xi32>
    %18 = tpu.iota {dimensions = array<i32: 1>} : vector<32x128xi32>
    %19 = vector.broadcast %16 : i32 to vector<32x128xi32>
    %20 = arith.addi %19, %17 : vector<32x128xi32>
    %c128_i32 = arith.constant 128 : i32
    %21 = vector.broadcast %c128_i32 : i32 to vector<32x128xi32>
    %22 = arith.muli %20, %21 : vector<32x128xi32>
    %23 = arith.addi %22, %18 : vector<32x128xi32>
    %c1024_i32 = arith.constant 1024 : i32
    %24 = vector.broadcast %c1024_i32 : i32 to vector<32x128xi32>
    %25 = arith.cmpi slt, %23, %24 : vector<32x128xi32>
    %cst_8 = arith.constant 0.000000e+00 : f32
    %26 = vector.broadcast %cst_8 : f32 to vector<32x128xf32>
    %27 = arith.select %25, %13, %26 : vector<32x128xi1>, vector<32x128xf32>
    %cst_9 = arith.constant 0.000000e+00 : f32
    %28 = vector.broadcast %cst_9 : f32 to vector<32x128xf32>
    %29 = arith.select %25, %6, %28 : vector<32x128xi1>, vector<32x128xf32>
    %c0_10 = arith.constant 0 : index
    %c0_11 = arith.constant 0 : index
    %c0_12 = arith.constant 0 : index
    %c0_13 = arith.constant 0 : index
    %30 = vector.load %arg5[%c0_10, %c0_11, %c0_12, %c0_13] : memref<1x1x8x128xf32, #tpu.memory_space<vmem>>, vector<1x1x8x128xf32>
    %31 = vector.shape_cast %30 : vector<1x1x8x128xf32> to vector<8x128xf32>
    %32 = arith.mulf %27, %29 : vector<32x128xf32>
    %33 = vector.shape_cast %32 : vector<32x128xf32> to vector<4x8x128xf32>
    %cst_14 = arith.constant dense<0.000000e+00> : vector<8x128xf32>
    %34 = vector.multi_reduction <add>, %33, %cst_14 [0] : vector<4x8x128xf32> to vector<8x128xf32>
    %35 = arith.addf %31, %34 : vector<8x128xf32>
    %c0_15 = arith.constant 0 : index
    %c0_16 = arith.constant 0 : index
    %c0_17 = arith.constant 0 : index
    %c0_18 = arith.constant 0 : index
    %36 = vector.load %arg5[%c0_15, %c0_16, %c0_17, %c0_18] : memref<1x1x8x128xf32, #tpu.memory_space<vmem>>, vector<1x1x8x128xf32>
    %37 = vector.shape_cast %36 : vector<1x1x8x128xf32> to vector<8x128xf32>
    %38 = vector.shape_cast %35 : vector<8x128xf32> to vector<1x1x8x128xf32>
    tpu.vector_store %arg5[%c0_15, %c0_16, %c0_17, %c0_18], %38 {strides = array<i32>} : memref<1x1x8x128xf32, #tpu.memory_space<vmem>>, vector<1x1x8x128xf32>,
    %c0_19 = arith.constant 0 : index
    %c0_20 = arith.constant 0 : index
    %c0_21 = arith.constant 0 : index
    %c0_22 = arith.constant 0 : index
    %39 = vector.load %arg6[%c0_19, %c0_20, %c0_21, %c0_22] : memref<1x1x8x128xf32, #tpu.memory_space<vmem>>, vector<1x1x8x128xf32>
    %40 = vector.shape_cast %39 : vector<1x1x8x128xf32> to vector<8x128xf32>
    %41 = arith.mulf %27, %27 : vector<32x128xf32>
    %42 = vector.shape_cast %41 : vector<32x128xf32> to vector<4x8x128xf32>
    %cst_23 = arith.constant dense<0.000000e+00> : vector<8x128xf32>
    %43 = vector.multi_reduction <add>, %42, %cst_23 [0] : vector<4x8x128xf32> to vector<8x128xf32>
    %44 = arith.addf %40, %43 : vector<8x128xf32>
    %c0_24 = arith.constant 0 : index
    %c0_25 = arith.constant 0 : index
    %c0_26 = arith.constant 0 : index
    %c0_27 = arith.constant 0 : index
    %45 = vector.load %arg6[%c0_24, %c0_25, %c0_26, %c0_27] : memref<1x1x8x128xf32, #tpu.memory_space<vmem>>, vector<1x1x8x128xf32>
    %46 = vector.shape_cast %45 : vector<1x1x8x128xf32> to vector<8x128xf32>
    %47 = vector.shape_cast %44 : vector<8x128xf32> to vector<1x1x8x128xf32>
    tpu.vector_store %arg6[%c0_24, %c0_25, %c0_26, %c0_27], %47 {strides = array<i32>} : memref<1x1x8x128xf32, #tpu.memory_space<vmem>>, vector<1x1x8x128xf32>,
    %c0_28 = arith.constant 0 : index
    %c0_29 = arith.constant 0 : index
    %c0_30 = arith.constant 0 : index
    %c0_31 = arith.constant 0 : index
    %48 = vector.load %arg7[%c0_28, %c0_29, %c0_30, %c0_31] : memref<1x1x8x128xf32, #tpu.memory_space<vmem>>, vector<1x1x8x128xf32>
    %49 = vector.shape_cast %48 : vector<1x1x8x128xf32> to vector<8x128xf32>
    %50 = arith.mulf %29, %29 : vector<32x128xf32>
    %51 = vector.shape_cast %50 : vector<32x128xf32> to vector<4x8x128xf32>
    %cst_32 = arith.constant dense<0.000000e+00> : vector<8x128xf32>
    %52 = vector.multi_reduction <add>, %51, %cst_32 [0] : vector<4x8x128xf32> to vector<8x128xf32>
    %53 = arith.addf %49, %52 : vector<8x128xf32>
    %c0_33 = arith.constant 0 : index
    %c0_34 = arith.constant 0 : index
    %c0_35 = arith.constant 0 : index
    %c0_36 = arith.constant 0 : index
    %54 = vector.load %arg7[%c0_33, %c0_34, %c0_35, %c0_36] : memref<1x1x8x128xf32, #tpu.memory_space<vmem>>, vector<1x1x8x128xf32>
    %55 = vector.shape_cast %54 : vector<1x1x8x128xf32> to vector<8x128xf32>
    %56 = vector.shape_cast %53 : vector<8x128xf32> to vector<1x1x8x128xf32>
    tpu.vector_store %arg7[%c0_33, %c0_34, %c0_35, %c0_36], %56 {strides = array<i32>} : memref<1x1x8x128xf32, #tpu.memory_space<vmem>>, vector<1x1x8x128xf32>,
    return
  }
  func.func @transform_0(%arg0: i32, %arg1: i32, %arg2: i32) -> (i32, i32, i32) {
    %c1_i32 = arith.constant 1 : i32
    %0 = arith.muli %arg0, %c1_i32 : i32
    %1 = arith.addi %0, %arg2 : i32
    %c0_i32 = arith.constant 0 : i32
    %c0_i32_0 = arith.constant 0 : i32
    return %arg1, %1, %c0_i32 : i32, i32, i32
  }
  func.func @transform_1(%arg0: i32, %arg1: i32, %arg2: i32) -> (i32, i32, i32) {
    %c1_i32 = arith.constant 1 : i32
    %0 = arith.muli %arg0, %c1_i32 : i32
    %1 = arith.addi %0, %arg2 : i32
    %c0_i32 = arith.constant 0 : i32
    %c0_i32_0 = arith.constant 0 : i32
    return %arg1, %1, %c0_i32 : i32, i32, i32
  }
  func.func @transform_2(%arg0: i32, %arg1: i32, %arg2: i32) -> (i32, i32, i32, i32) {
    %c0_i32 = arith.constant 0 : i32
    %c0_i32_0 = arith.constant 0 : i32
    %c0_i32_1 = arith.constant 0 : i32
    return %arg0, %arg1, %c0_i32, %c0_i32_0 : i32, i32, i32, i32
  }
  func.func @transform_3(%arg0: i32, %arg1: i32, %arg2: i32) -> (i32, i32, i32, i32) {
    %c0_i32 = arith.constant 0 : i32
    %c0_i32_0 = arith.constant 0 : i32
    %c0_i32_1 = arith.constant 0 : i32
    return %arg0, %arg1, %c0_i32, %c0_i32_0 : i32, i32, i32, i32
  }
  func.func @transform_4(%arg0: i32, %arg1: i32, %arg2: i32) -> (i32, i32, i32, i32) {
    %c0_i32 = arith.constant 0 : i32
    %c0_i32_0 = arith.constant 0 : i32
    %c0_i32_1 = arith.constant 0 : i32
    return %arg0, %arg1, %c0_i32, %c0_i32_0 : i32, i32, i32, i32
  }
}

</mosaic_0001>

<bundles_post_ra>
// kernel: tpu_custom_call.1
= control target key start
LH: loop header
LB: loop body
LE: loop exit
PB: predicated region body
PF: predicated region fallthrough
CT: control target
= control target key end

     0   :  { %s1209_s0 = inlined_call_operand.hbm [shape: f32[2,8,128], index: 0, kind: input, shape index: {}]   ;;  %s1210_s1 = inlined_call_operand.hbm [shape: f32[2,8,128], index: 1, kind: input, shape index: {}]   ;;  %s1211_s2 = inlined_call_operand.hbm [shape: f32[1,2,8,128], index: 2, kind: output, shape index: {0}]   ;;  %s1212_s3 = inlined_call_operand.hbm [shape: f32[1,2,8,128], index: 3, kind: output, shape index: {1}]   ;;  %s1213_s4 = inlined_call_operand.hbm [shape: f32[1,2,8,128], index: 4, kind: output, shape index: {2}]  }
   0x1   :  { %1216 = sst [smem:[#allocation16_spill]] %s1209_s0 }
   0x2   :  { %10 = vsyncpa [#allocation3], 0 }
   0x3   :  { %12 = vsyncpa [#allocation3 + $0x1], 0 }
   0x4   :  { %13 = vsyncpa [#allocation6], 0 }
   0x5   :  { %15 = vsyncpa [#allocation6 + $0x1], 0 }
   0x6   :  { %16 = vsyncpa [#allocation4], 0 }
   0x7   :  { %18 = vsyncpa [#allocation4 + $0x1], 0 }
   0x8   :  { %19 = vsyncpa [#allocation9], 0 }
   0x9   :  { %21 = vsyncpa [#allocation9 + $0x1], 0  ;;  %s977_s15 = smov 0   ;;  %s979_s16 = smov 0  }
   0xa   :  { %s981_s17 = smov 0   ;;  %s983_s18 = smov 0  }
   0xb   :  { %s985_s19 = smov 0   ;;  %s987_s20 = smov 0  }
   0xc LB: > { %s1008_s21 = sadd.s32 4294967295, %s941_s20   ;;  %s1214_s22 = sadd.s32 4294967294, %s941_s20   ;;  %s941_s20 = sphi %s987_s20, %s27_s20   ;;  %s937_s19 = sphi %s985_s19, %s1229_s19   ;;  %s933_s18 = sphi %s983_s18, %s1228_s18   ;;  %s929_s17 = sphi %s981_s17, %s1227_s17   ;;  %s925_s16 = sphi %s979_s16, %s1226_s16   ;;  %s921_s15 = sphi %s977_s15, %s1225_s15  }
   0xd   : > { %s42_s23 = sadd.s32 1, %s937_s19  ;;  %s57_s24 = sadd.s32 1, %s929_s17 }
   0xe   : > { %p44_p0 = scmp.ge.s32.totalorder %s42_s23, 2  ;;  %p64_p1 = scmp.ne.s32.totalorder %s929_s17, %s925_s16 }
   0xf   : > { %p65_p2 = scmp.eq.s32.totalorder %s941_s20, 0  ;;  %p70_p3 = scmp.ne.s32.totalorder %s925_s16, %s921_s15 }
  0x10   : > { %s1231_s23 = smov (%p44_p0, %s42_s23), 0  ;;  %p71_p5 = scmp.eq.s32.totalorder %s1008_s21, 0 }
  0x11   : > { %1217 = sst [smem:[#allocation15_spill]] %s1231_s23  ;;  %p1020_p4 = por %p65_p2, %p64_p1 }
  0x12   : > { %s52_s26 = ssub.s32 %s937_s19, %s1231_s23  ;;  %p126_p6 = scmp.eq.s32.totalorder %s1008_s21, 1 }
  0x13   : > { %p55_p7 = scmp.eq.s32.totalorder %s52_s26, 0  ;;  %p1028_p8 = por %p71_p5, %p70_p3 }
  0x14   : > { %p1032_p9 = por %p126_p6, %p64_p1  ;;  %p132_p10 = scmp.eq.s32.totalorder %s1214_s22, 1 }
  0x15   : > { %s1039_s29 = scalar_select %p55_p7, %s929_s17, %s57_s24  }
  0x16   : > { %p1041_p11 = por %p132_p10, %p70_p3  ;;  %p658_p12 = scmp.ge.s32.totalorder %s941_s20, 2 }
  0x18   : > { %204 = sbr.rel (%p658_p12) target bundleno = 67 (0x43), region = 16 }
  0x1d   : > { %207 = sbr.rel (!%p1020_p4) target bundleno = 48 (0x30), region = 20  ;;  %s208_s5 = sand.u32 (%p1020_p4), 1, %s929_s17  }
  0x1e   : > { %s659_s6 = sshll.u32 (%p1020_p4), %s208_s5, 5  ;;  %s209_s7 = scalar_lea.sflag (%p1020_p4), [#allocation3], %s208_s5 }
  0x1f   : > { %s212_s8 = scalar_lea.vmem (%p1020_p4), [#allocation2], %s659_s6 }
  0x22   : > { %219 = vsyncadd %s209_s7, 384  ;;  %s660_s9 = sshll.u32 %s937_s19, 7  ;;  %s225_s10 = sshll.u32 %s212_s8, 4  ;;  %s226_s10 = int_to_ptr.vmem [resolvable:$true] %s225_s10 }
  0x23   : > { %s1222_s0 = sld [smem:[#allocation16_spill]]  ;;  %s767_s14 = scalar_lea.vmem %s226_s10, 128 }
  0x24   : > { %p768_p13 = scmp.ne.s32.totalorder %s226_s10, %s767_s14  ;;  %s943_s24 = smov [#allocation2]  }
  0x25   : > { %s769_s26 = sshll.u32 %s943_s24, 4  ;;  %s770_s26 = int_to_ptr.vmem [resolvable:$false] %s769_s26 }
  0x26   : > { %s771_s22 = scalar_lea.vmem %s770_s26, 1024  ;;  %p772_p0 = scmp.lt.s32.totalorder %s226_s10, %s770_s26 }
  0x27   : > { %p773_p1 = scmp.lt.s32.totalorder %s771_s22, %s767_s14 }
  0x29   : > { %s223_s13 = scalar_lea.hbm %s1222_s0, %s660_s9  ;;  %p774_p2 = por %p773_p1, %p772_p0 }
  0x2b   : > { %p775_p3 = pnand %p774_p2, %p768_p13 }
  0x2d   : > { %778 = shalt.err (!%p775_p3)
}
  0x2e   : > { %s944_s5 = smov 128   ;;  %s945_s6 = smov 8  }
  0x2f   : > { %231 = dma.hbm_to_vmem [thread:$0]  %s223_s13, 128, %s226_s10, %s209_s7, %s944_s5, %s944_s5, %s945_s6  }
  0x30 PF: > { %234 = sbr.rel (!%p1020_p4) target bundleno = 67 (0x43), region = 24  ;;  %s235_s8 = sand.u32 (%p1020_p4), 1, %s929_s17  }
  0x31   : > { %s661_s9 = sshll.u32 (%p1020_p4), %s235_s8, 5  ;;  %s236_s11 = scalar_lea.sflag (%p1020_p4), [#allocation6], %s235_s8 }
  0x32   : > { %s239_s12 = scalar_lea.vmem (%p1020_p4), [#allocation5], %s661_s9 }
  0x35   : > { %246 = vsyncadd %s236_s11, 384  ;;  %s662_s24 = sshll.u32 %s937_s19, 7  ;;  %s252_s26 = sshll.u32 %s239_s12, 4  ;;  %s253_s26 = int_to_ptr.vmem [resolvable:$true] %s252_s26 }
  0x36   : > { %s250_s0 = scalar_lea.hbm %s1210_s1, %s662_s24  ;;  %s789_s23 = scalar_lea.vmem %s253_s26, 128 }
  0x37   : > { %p790_p5 = scmp.ne.s32.totalorder %s253_s26, %s789_s23  ;;  %s946_s7 = smov [#allocation5]  }
  0x38   : > { %s791_s10 = sshll.u32 %s946_s7, 4  ;;  %s792_s10 = int_to_ptr.vmem [resolvable:$false] %s791_s10 }
  0x39   : > { %s793_s25 = scalar_lea.vmem %s792_s10, 1024  ;;  %p794_p4 = scmp.lt.s32.totalorder %s253_s26, %s792_s10 }
  0x3a   : > { %p795_p6 = scmp.lt.s32.totalorder %s793_s25, %s789_s23 }
  0x3c   : > { %p796_p7 = por %p795_p6, %p794_p4 }
  0x3e   : > { %p797_p10 = pnand %p796_p7, %p790_p5 }
  0x40   : > { %800 = shalt.err (!%p797_p10)
}
  0x41   : > { %s947_s13 = smov 128   ;;  %s948_s5 = smov 8  }
  0x42   : > { %258 = dma.hbm_to_vmem [thread:$0]  %s250_s0, 128, %s253_s26, %s236_s11, %s947_s13, %s947_s13, %s948_s5  }
  0x43 PF: > { %p663_p13 = scmp.ge.s32.totalorder %s941_s20, 1  ;;  %p260_p0 = scmp.lt.s32.totalorder %s941_s20, 3 }
  0x45   : > { %p261_p1 = pnand %p663_p13, %p260_p0 }
  0x46   : > { %s1065_s6 = sand.u32 (!%p261_p1), 1, %s925_s16  }
  0x47   : > { %264 = sbr.rel (%p261_p1) target bundleno = 167 (0xa7), region = 28  ;;  %s664_s23 = sshll.u32 (!%p261_p1), %s1065_s6, 5 }
  0x48   : > { %s267_s8 = scalar_lea.sflag (!%p261_p1), [#allocation3], %s1065_s6  ;;  %s270_s9 = scalar_lea.vmem (!%p261_p1), [#allocation2], %s664_s23 }
  0x4c   : > { %904 = dma.done.wait (%p1028_p8), %s267_s8, 512  }
  0x4d   : > { %906 = vsyncadd (%p1028_p8), %s267_s8, 4294966784  ;;  %s276_s0 = scalar_lea.sflag [#allocation6], %s1065_s6  ;;  %s279_s11 = scalar_lea.vmem [#allocation5], %s664_s23 }
  0x4e   : > { %908 = dma.done.wait (%p1028_p8), %s276_s0, 512  }
  0x4f   : > { %910 = vsyncadd (%p1028_p8), %s276_s0, 4294966784  ;;  %v360_v0 = vlaneseq  ;;  %v334_v10 = vld [vmem:[%s270_s9] sm:$0xff]  ;;  %v335_v11 = vld [vmem:[%s270_s9 + $0x8] sm:$0xff]  ;;  %s1083_s27 = sshll.u32 %s1065_s6, 3  ;;  %s427_s24 = sand.u32 1, %s1008_s21  }
  0x50   : > { %v336_v12 = vld [vmem:[%s270_s9 + $0x10] sm:$0xff]  ;;  %v337_v14 = vld [vmem:[%s270_s9 + $0x18] sm:$0xff]  ;;  %v342_v15 = vmul.f32 0.5, %v334_v10  ;;  %v343_v16 = vmul.f32 0.5, %v335_v11  ;;  %v338_v19 = vld [vmem:[%s279_s11] sm:$0xff]  ;;  %s318_s12 = scalar_lea.vmem [#allocation10], %s1083_s27 }
  0x51   : > { %v361_v1 = vshrl.u32 %v360_v0, 7  ;;  %v366_v2 = vand.u32 127, %v360_v0  ;;  %v344_v17 = vmul.f32 0.5, %v336_v12  ;;  %v339_v20 = vld [vmem:[%s279_s11 + $0x8] sm:$0xff]  ;;  %v345_v21 = vmul.f32 0.5, %v337_v14  ;;  %v340_v24 = vld [vmem:[%s279_s11 + $0x10] sm:$0xff] }
  0x52   : > { %v341_v25 = vld [vmem:[%s279_s11 + $0x18] sm:$0xff]  ;;  %749 = vtanh.f32 %v342_v15  ;;  %s672_s26 = sshll.u32 %s933_s18, 7  ;;  %s311_s22 = scalar_lea.vmem [#allocation8], %s1083_s27 }
  0x53   : > { %v362_v3 = vadd.s32 8, %v361_v1  ;;  %v363_v4 = vadd.s32 16, %v361_v1  ;;  %v364_v5 = vadd.s32 24, %v361_v1  ;;  %v372_v6 = vmul.u32 128, %v361_v1  ;;  %s463_s14 = sshll.u32 %s311_s22, 4  ;;  %s304_s7 = scalar_lea.vmem [#allocation7], %s1083_s27  ;;  %s1103_s14 = int_to_ptr.vmem [resolvable:$true] %s463_s14 }
  0x54   : > { %751 = vtanh.f32 %v343_v16  ;;  %s448_s10 = sshll.u32 %s304_s7, 4  ;;  %s478_s25 = sshll.u32 %s318_s12, 4  ;;  %s1110_s10 = int_to_ptr.vmem [resolvable:$true] %s448_s10  ;;  %s1112_s25 = int_to_ptr.vmem [resolvable:$true] %s478_s25 }
  0x55   : > { %v373_v7 = vmul.u32 128, %v362_v3  ;;  %v374_v8 = vmul.u32 128, %v363_v4  ;;  %v376_v9 = vadd.s32 %v372_v6, %v366_v2  ;;  %753 = vtanh.f32 %v344_v17  ;;  %s1101_s23 = scalar_lea.hbm %s1212_s3, %s672_s26  ;;  %s1108_s18 = scalar_lea.hbm %s1211_s2, %s672_s26 }
  0x56   : > { %v375_v13 = vmul.u32 128, %v364_v5  ;;  %755 = vtanh.f32 %v345_v21  ;;  %s1117_s11 = scalar_lea.hbm %s1213_s4, %s672_s26  ;;  %s1119_s27 = scalar_lea.sflag [#allocation9], %s427_s24 }
  0x57   : > { %v377_v18 = vadd.s32 %v373_v7, %v366_v2  ;;  %v378_v22 = vadd.s32 %v374_v8, %v366_v2  ;;  %vm380_vm0 = vcmp.lt.s32.totalorder %v376_v9, 1024  ;;  %s949_s13 = smov [#allocation8]  }
  0x58   : > { %v379_v23 = vadd.s32 %v375_v13, %v366_v2  ;;  %v388_v26 = vsel %vm380_vm0, %v338_v19, 0.0  ;;  %s805_s5 = sshll.u32 %s949_s13, 4  ;;  %s806_s5 = int_to_ptr.vmem [resolvable:$false] %s805_s5 }
  0x59   : > { %vm381_vm1 = vcmp.lt.s32.totalorder %v377_v18, 1024  ;;  %vm382_vm2 = vcmp.lt.s32.totalorder %v378_v22, 1024  ;;  %v413_v30 = vmul.f32 %v388_v26, %v388_v26  ;;  %s807_s21 = scalar_lea.vmem %s806_s5, 256  ;;  %p808_p5 = scmp.lt.s32.totalorder %s1103_s14, %s806_s5 }
  0x5a   : > { %vm383_vm3 = vcmp.lt.s32.totalorder %v379_v23, 1024  ;;  %v389_v27 = vsel %vm381_vm1, %v339_v20, 0.0  ;;  %v390_v28 = vsel %vm382_vm2, %v340_v24, 0.0 }
  0x5b   : > { %v391_v29 = vsel %vm383_vm3, %v341_v25, 0.0  ;;  %v414_v31 = vmul.f32 %v389_v27, %v389_v27  ;;  %v415_v32 = vmul.f32 %v390_v28, %v390_v28 }
  0x5c   : > { %v416_v33 = vmul.f32 %v391_v29, %v391_v29 }
  0x5d   : > { %v417_v34 = vadd.f32 %v414_v31, %v413_v30 }
  0x5f   : > { %v418_v35 = vadd.f32 %v417_v34, %v415_v32  ;;  %v750_v37 = vpop.eup %749 }
  0x60   : > { %v350_v39 = vmul.f32 0.5, %v750_v37 }
  0x61   : > { %v419_v36 = vadd.f32 %v418_v35, %v416_v33  ;;  %v752_v38 = vpop.eup %751 }
  0x62   : > { %v754_v40 = vpop.eup %753  ;;  %v351_v41 = vmul.f32 0.5, %v752_v38  ;;  %v354_v44 = vadd.f32 0.5, %v350_v39 }
  0x63   : > { %421 = vst [vmem:[%s318_s12] sm:$0xff] %v419_v36  ;;  %v756_v42 = vpop.eup %755  ;;  %v352_v43 = vmul.f32 0.5, %v754_v40  ;;  %s801_s12 = scalar_lea.vmem %s1103_s14, 128 }
  0x64   : > { %v353_v45 = vmul.f32 0.5, %v756_v42  ;;  %v355_v46 = vadd.f32 0.5, %v351_v41  ;;  %v384_v48 = vsel %vm380_vm0, %v354_v44, 0.0  ;;  %p802_p8 = scmp.ne.s32.totalorder %s1103_s14, %s801_s12  ;;  %p809_p4 = scmp.lt.s32.totalorder %s807_s21, %s801_s12 }
  0x65   : > { %v356_v47 = vadd.f32 0.5, %v352_v43  ;;  %v403_v51 = vmul.f32 %v384_v48, %v384_v48  ;;  %v393_v52 = vmul.f32 %v388_v26, %v384_v48 }
  0x66   : > { %v357_v49 = vadd.f32 0.5, %v353_v45  ;;  %v385_v50 = vsel %vm381_vm1, %v355_v46, 0.0  ;;  %p803_p2 = pnand %p802_p8, %p1032_p9  ;;  %p810_p6 = por %p809_p4, %p808_p5 }
  0x67   : > { %v386_v53 = vsel %vm382_vm2, %v356_v47, 0.0  ;;  %v404_v54 = vmul.f32 %v385_v50, %v385_v50  ;;  %v394_v55 = vmul.f32 %v389_v27, %v385_v50 }
  0x68   : > { %v387_v56 = vsel %vm383_vm3, %v357_v49, 0.0  ;;  %v405_v57 = vmul.f32 %v386_v53, %v386_v53  ;;  %v395_v58 = vmul.f32 %v390_v28, %v386_v53  ;;  %p804_p3 = pneg %p803_p2 }
  0x69   : > { %v406_v59 = vmul.f32 %v387_v56, %v387_v56  ;;  %v407_v60 = vadd.f32 %v404_v54, %v403_v51  ;;  %v396_v61 = vmul.f32 %v391_v29, %v387_v56  ;;  %v397_v62 = vadd.f32 %v394_v55, %v393_v52 }
  0x6a   : > { %p811_p7 = pnand %p810_p6, %p804_p3 }
  0x6b   : > { %v408_v63 = vadd.f32 %v407_v60, %v405_v57  ;;  %v398_v0 = vadd.f32 %v397_v62, %v395_v58 }
  0x6d   : > { %v409_v1 = vadd.f32 %v408_v63, %v406_v59  ;;  %v399_v2 = vadd.f32 %v398_v0, %v396_v61 }
  0x6f   : > { %411 = vst [vmem:[%s311_s22] sm:$0xff] %v409_v1  ;;  %401 = vst [vmem:[%s304_s7] sm:$0xff] %v399_v2 }
  0x70   : > { %814 = shalt.err (!%p811_p7)
}
  0x71   : > { %s815_s24 = scalar_lea.hbm %s1101_s23, 128  ;;  %s819_s7 = scalar_lea.hbm %s1212_s3, 256 }
  0x72   : > { %p816_p10 = scmp.ne.s32.totalorder %s1101_s23, %s815_s24  ;;  %p820_p1 = scmp.lt.s32.totalorder %s1101_s23, %s1212_s3 }
  0x73   : > { %p821_p8 = scmp.lt.s32.totalorder %s819_s7, %s815_s24 }
  0x74   : > { %p817_p13 = pnand %p816_p10, %p1032_p9 }
  0x75   : > { %p822_p2 = por %p821_p8, %p820_p1 }
  0x76   : > { %p818_p0 = pneg %p817_p13 }
  0x78   : > { %p823_p3 = pnand %p822_p2, %p818_p0 }
  0x7a   : > { %826 = shalt.err (!%p823_p3)
}
  0x7b   : > { %680 = dma.vmem_to_hbm [thread:$0]  (%p1032_p9), %s1103_s14, 128, %s1101_s23, %s1119_s27  }
  0x7c   : > { %s423_s0 = scalar_lea.sflag [#allocation4], %s1065_s6  ;;  %s827_s12 = scalar_lea.vmem %s1110_s10, 128 }
  0x7d   : > { %p828_p5 = scmp.ne.s32.totalorder %s1110_s10, %s827_s12  ;;  %s950_s13 = smov [#allocation7]  }
  0x7e   : > { %s831_s5 = sshll.u32 %s950_s13, 4  ;;  %s832_s5 = int_to_ptr.vmem [resolvable:$false] %s831_s5 }
  0x7f   : > { %p829_p4 = pnand %p828_p5, %p1032_p9  ;;  %s833_s21 = scalar_lea.vmem %s832_s5, 256 }
  0x80   : > { %p834_p7 = scmp.lt.s32.totalorder %s1110_s10, %s832_s5  ;;  %p835_p10 = scmp.lt.s32.totalorder %s833_s21, %s827_s12 }
  0x81   : > { %p830_p6 = pneg %p829_p4 }
  0x82   : > { %p836_p13 = por %p835_p10, %p834_p7 }
  0x84   : > { %p837_p0 = pnand %p836_p13, %p830_p6 }
  0x86   : > { %840 = shalt.err (!%p837_p0)
}
  0x87   : > { %s841_s14 = scalar_lea.hbm %s1108_s18, 128  ;;  %s845_s24 = scalar_lea.hbm %s1211_s2, 256 }
  0x88   : > { %p842_p1 = scmp.ne.s32.totalorder %s1108_s18, %s841_s14  ;;  %p846_p3 = scmp.lt.s32.totalorder %s1108_s18, %s1211_s2 }
  0x89   : > { %p847_p5 = scmp.lt.s32.totalorder %s845_s24, %s841_s14 }
  0x8a   : > { %p843_p8 = pnand %p842_p1, %p1032_p9 }
  0x8b   : > { %p848_p4 = por %p847_p5, %p846_p3 }
  0x8c   : > { %p844_p2 = pneg %p843_p8 }
  0x8e   : > { %p849_p6 = pnand %p848_p4, %p844_p2 }
  0x90   : > { %852 = shalt.err (!%p849_p6)
}
  0x91   : > { %679 = dma.vmem_to_hbm [thread:$0]  (%p1032_p9), %s1110_s10, 128, %s1108_s18, %s423_s0  }
  0x92   : > { %s853_s7 = scalar_lea.vmem %s1112_s25, 128  ;;  %s951_s8 = smov [#allocation10]  }
  0x93   : > { %p854_p7 = scmp.ne.s32.totalorder %s1112_s25, %s853_s7  ;;  %s857_s9 = sshll.u32 %s951_s8, 4  ;;  %s858_s9 = int_to_ptr.vmem [resolvable:$false] %s857_s9 }
  0x94   : > { %s859_s12 = scalar_lea.vmem %s858_s9, 256  ;;  %p860_p0 = scmp.lt.s32.totalorder %s1112_s25, %s858_s9 }
  0x95   : > { %p855_p10 = pnand %p854_p7, %p1032_p9  ;;  %p861_p1 = scmp.lt.s32.totalorder %s859_s12, %s853_s7 }
  0x97   : > { %p856_p13 = pneg %p855_p10  ;;  %p862_p8 = por %p861_p1, %p860_p0 }
  0x99   : > { %p863_p2 = pnand %p862_p8, %p856_p13 }
  0x9b   : > { %866 = shalt.err (!%p863_p2)
}
  0x9c   : > { %s867_s13 = scalar_lea.hbm %s1117_s11, 128  ;;  %s871_s0 = scalar_lea.hbm %s1213_s4, 256 }
  0x9d   : > { %p868_p3 = scmp.ne.s32.totalorder %s1117_s11, %s867_s13  ;;  %p872_p6 = scmp.lt.s32.totalorder %s1117_s11, %s1213_s4 }
  0x9e   : > { %p873_p7 = scmp.lt.s32.totalorder %s871_s0, %s867_s13 }
  0x9f   : > { %p869_p5 = pnand %p868_p3, %p1032_p9 }
  0xa0   : > { %p874_p10 = por %p873_p7, %p872_p6 }
  0xa1   : > { %p870_p4 = pneg %p869_p5 }
  0xa3   : > { %p875_p13 = pnand %p874_p10, %p870_p4 }
  0xa5   : > { %878 = shalt.err (!%p875_p13)
}
  0xa6   : > { %681 = dma.vmem_to_hbm [thread:$0]  (%p1032_p9), %s1112_s25, 128, %s1117_s11, %s1119_s27  }
  0xa7 PF: > { %s490_s14 = sand.u32 1, %s921_s15   ;;  %p686_p0 = pnand %p658_p12, %p1041_p11 }
  0xa8   : > { %s491_s6 = scalar_lea.sflag [#allocation4], %s490_s14 }
  0xa9   : > { %p687_p1 = pneg %p686_p0 }
  0xab   : > { %912 = dma.done.wait (%p687_p1), %s491_s6, 128  }
  0xac   : > { %914 = vsyncadd (%p687_p1), %s491_s6, 4294967168  ;;  %s1223_s23 = sadd.s32 4294967294, %s941_s20  }
  0xad   : > { %s499_s24 = sand.u32 1, %s1223_s23  }
  0xae   : > { %s500_s28 = scalar_lea.sflag [#allocation9], %s499_s24 }
  0xaf   : > { %916 = dma.done.wait (%p687_p1), %s500_s28, 256  }
  0xb0   : > { %918 = vsyncadd (%p687_p1), %s500_s28, 4294967040  ;;  %s27_s20 = sadd.s32 1, %s941_s20   ;;  %s1224_s30 = sld [smem:[#allocation15_spill]] }
  0xb1   : > { %p24_p9 = scmp.ge.s32.totalorder %s27_s20, 4   ;;  %s1225_s15 = smov %s925_s16 }
  0xb2   : > { %s1226_s16 = smov %s929_s17  ;;  %s1227_s17 = smov %s1039_s29 }
  0xb3   : > { %s1228_s18 = smov %s937_s19  ;;  %26 = sbr.rel (!%p24_p9) target bundleno = 12 (0xc), region = 122 }
  0xb6   : > { %s1229_s19 = smov %s1224_s30 }
  0xb8   :  { %514 = vsyncpa [#allocation3], 1 }
  0xb9   :  { %516 = vsyncpa [#allocation3 + $0x1], 1 }
  0xba   :  { %517 = vsyncpa [#allocation6], 1 }
  0xbb   :  { %519 = vsyncpa [#allocation6 + $0x1], 1 }
  0xbc   :  { %520 = vsyncpa [#allocation4], 1 }
  0xbd   :  { %522 = vsyncpa [#allocation4 + $0x1], 1 }
  0xbe   :  { %523 = vsyncpa [#allocation9], 1 }
  0xbf   :  { %525 = vsyncpa [#allocation9 + $0x1], 1 }

</bundles_post_ra>
